<compile_context>
chip_gen: v7x
topology: tpu7x:2x2x1
jax: 0.10.0
libtpu: 0.0.40
codegen_flags: <defaults>
</compile_context>

<pallas_src>
import jax
import jax.numpy as jnp
import numpy as np
from jax.experimental import pallas as pl
from jax.experimental.pallas import tpu as pltpu

_LANES = 128  # vreg lane width; used only to present a tidy 2-D slab to the DMA.


def _dma_copy_kernel(x_hbm_ref, o_hbm_ref, dma_sem):
    """Identity forward: one direct HBM->HBM DMA of the whole array."""
    cp = pltpu.make_async_copy(x_hbm_ref, o_hbm_ref, dma_sem)
    cp.start()
    cp.wait()


@jax.jit
def fullnet_forward(x: jax.Array) -> jax.Array:
    """Pallas implementation of FullNet.forward (identity).

    Note: the mathematically optimal implementation is `return x` (zero HBM
    traffic).  The Pallas call below materializes a fresh output buffer via a
    single HBM->HBM DMA, which is the cheapest way to do so (HBM-roofline
    bound, no VMEM staging).
    """
    orig_shape = x.shape
    total = x.size

    # Present either a lane-dense 2-D slab or a flat 1-D stripe to the DMA.
    # (Both are metadata-only reshapes under jit; the DMA engine is
    # shape-agnostic, so no padding is required for the non-divisible case.)
    if total % _LANES == 0:
        x_flat = x.reshape(total // _LANES, _LANES)
    else:
        x_flat = x.reshape(total)

    out = pl.pallas_call(
        _dma_copy_kernel,
        out_shape=jax.ShapeDtypeStruct(x_flat.shape, x_flat.dtype),
        in_specs=[pl.BlockSpec(memory_space=pl.ANY)],   # raw HBM ref, no auto-DMA
        out_specs=pl.BlockSpec(memory_space=pl.ANY),    # raw HBM ref, no auto-DMA
        scratch_shapes=[pltpu.SemaphoreType.DMA],       # completion semaphore
    )(x_flat)

    return out.reshape(orig_shape)


if __name__ == "__main__":
    key = jax.random.PRNGKey(0)
    # NCHW, small shapes: batch=2, channels=4, spatial=16x16.
    x = jax.random.normal(key, (2, 4, 16, 16), dtype=jnp.float32)
    x_host = np.asarray(jax.device_get(x))  # host-side reference (identity)

    y = fullnet_forward(x)
    jax.block_until_ready(y)

    # Correctness: forward is the identity, so output must equal input exactly.
    assert y.shape == x.shape
    assert y.dtype == x.dtype
    assert np.array_equal(np.asarray(jax.device_get(y)), x_host)

    print("KERNEL_OK")
</pallas_src>

<mosaic_0001>
module attributes {stable_mosaic.version = 11 : i64} {
  func.func @_dma_copy_kernel(%arg0: memref<16x128xf32, #tpu.memory_space<any>>, %arg1: memref<16x128xf32, #tpu.memory_space<any>>, %arg2: memref<!tpu.dma_semaphore, #tpu.memory_space<semaphore_mem>>) attributes {dimension_semantics = [], scalar_prefetch = 0 : i64, scratch_operands = 1 : i64, tpu.core_type = #tpu.core_type<tc>} {
    tpu.enqueue_dma source(%arg0 : memref<16x128xf32, #tpu.memory_space<any>>) target(%arg1 : memref<16x128xf32, #tpu.memory_space<any>>) target_semaphore(%arg2 : memref<!tpu.dma_semaphore, #tpu.memory_space<semaphore_mem>>)
    tpu.wait_dma2 semaphore(%arg2 : memref<!tpu.dma_semaphore, #tpu.memory_space<semaphore_mem>>) src(%arg0 : memref<16x128xf32, #tpu.memory_space<any>>) dst(%arg1 : memref<16x128xf32, #tpu.memory_space<any>>)
    return
  }
}

</mosaic_0001>

<bundles_post_ra>
// kernel: fullnet_forward.1
= control target key start
LH: loop header
LB: loop body
LE: loop exit
PB: predicated region body
PF: predicated region fallthrough
CT: control target
= control target key end

     0   :  { %s92_s0 = inlined_call_operand.vmem [shape: f32[16,128], index: 0, kind: input, shape index: {}]   ;;  %s93_s1 = inlined_call_operand.vmem [shape: f32[16,128], index: 1, kind: output, shape index: {}]  }
   0x1   :  { %v38_v0 = vld [vmem:[%s92_s0] sm:$0xff]  ;;  %v40_v1 = vld [vmem:[%s92_s0 + $0x8] sm:$0xff] }
   0x2   :  { %39 = vst [vmem:[%s93_s1] sm:$0xff] %v38_v0  ;;  %41 = vst [vmem:[%s93_s1 + $0x8] sm:$0xff] %v40_v1 }
   0x3   :  { %49 = vsyncadd [#allocation2], 256 }
   0x4   :  { %68 = dma.done.wait [#allocation2], 256 }
   0x5   :  { %69 = vsyncadd [#allocation2], 4294967040 }
   0x6   :  { %53 = vsyncmov [#allocation2] }
   0x9   :  { %s54_s14 = vpop.sfrf %53 }
   0xa   :  { %p67_p0 = scmp.ne.s32.totalorder %s54_s14, 0 }
   0xc   :  { %58 = shalt.err (%p67_p0)  }

</bundles_post_ra>
